<compile_context>
chip_gen: v6e
topology: v6e:2x2x1
jax: 0.10.0
libtpu: 0.0.40
codegen_flags: <defaults>
</compile_context>

<pallas_src>
import math

import jax
import jax.numpy as jnp
from jax import lax
from jax.experimental import pallas as pl
from jax.experimental.pallas import tpu as pltpu


# ----------------------------------------------------------------------------
# Kernel 1: fused, lane-dense gate projection over ALL timesteps (MXU work).
# ----------------------------------------------------------------------------
def _proj_kernel(x_ref, w_ref, b_ref, g_ref):
    g_ref[...] = (
        jnp.dot(x_ref[...], w_ref[...], preferred_element_type=jnp.float32)
        + b_ref[...]
    )


# ----------------------------------------------------------------------------
# Kernel 2: sequential recurrence (pure VPU state update, time-chunked).
# ----------------------------------------------------------------------------
def _xlstm_recurrent_kernel(mg_ref, lg_ref, h_ref, c_ref, m_scr, n_scr):
    # mg_ref: (TT, 4, B, H, E)   gate-major multilinear gates (o_, v, k, q)
    # lg_ref: (TT, 2, B, H)      gate-major linear gates (i_, f_)
    # h_ref : (B, H, E)          final hidden state (written on last step only)
    # c_ref : (B, H, E, E)       cell state (VMEM-resident accumulator output)
    # m_scr : (B, H)             stabilizer state
    # n_scr : (B, H, E)          normalizer state
    chunk = pl.program_id(0)
    TT = mg_ref.shape[0]

    # reset_states(): zero recurrent state at the first chunk.
    @pl.when(chunk == 0)
    def _init():
        c_ref[...] = jnp.zeros_like(c_ref)
        m_scr[...] = jnp.zeros_like(m_scr)
        n_scr[...] = jnp.zeros_like(n_scr)

    def step(tt, carry):
        i_ = lg_ref[tt, 0]                       # (B, H)
        f_ = lg_ref[tt, 1]                       # (B, H)
        v = mg_ref[tt, 1]                        # (B, H, E)
        k = mg_ref[tt, 2]                        # (B, H, E)

        # stabilized exponential gating (exp on EUP — off the VALU slot)
        m_prev = m_scr[...]
        fm = f_ + m_prev
        m_new = jnp.maximum(fm, i_)
        i_g = jnp.exp(i_ - m_new)
        f_g = jnp.exp(fm - m_new)
        m_scr[...] = m_new

        # fused state updates (no standalone (B,H,E,E) temporaries)
        iv = i_g[:, :, None] * v                 # (B, H, E)
        c_ref[...] = (f_g[:, :, None, None] * c_ref[...]
                      + iv[:, :, :, None] * k[:, :, None, :])
        n_scr[...] = f_g[:, :, None] * n_scr[...] + i_g[:, :, None] * k
        return carry

    lax.fori_loop(0, TT, step, 0, unroll=True)

    # Epilogue only on the very last timestep — the reference overwrites h
    # every step but only the last value is returned, so earlier writes are
    # dead work.
    @pl.when(chunk == pl.num_programs(0) - 1)
    def _epilogue():
        o = jax.nn.sigmoid(mg_ref[TT - 1, 0])              # (B, H, E)
        q = mg_ref[TT - 1, 3]                              # (B, H, E)
        c = c_ref[...]
        cq = jnp.sum(c * q[:, :, :, None], axis=2)         # (B, H, E)
        denom = jnp.maximum(jnp.sum(n_scr[...] * q, axis=-1), 1.0)  # (B, H)
        # NOTE: matches reference clamp(n.q, 1, inf) (no abs), per the spec.
        # Runs once, so an exact divide is fine.
        h_ref[...] = o * cq / denom[:, :, None]


# ----------------------------------------------------------------------------
# Helpers
# ----------------------------------------------------------------------------
def _round_up(v, m):
    return (v + m - 1) // m * m


def _pick_row_tile(tb):
    # Largest tile that divides TB and respects the (8,128) second-minor rule
    # (or equals the full dim when TB is not a multiple of 8).
    if tb % 8 != 0:
        return tb
    for cand in (512, 256, 128, 64, 32, 16, 8):
        if tb % cand == 0:
            return cand
    return tb


def _pick_time_chunk(t):
    # Big enough to amortize per-grid-step overhead, small enough that the
    # per-chunk gate slab stays tiny in VMEM; fall back to one chunk.
    for cand in (64, 32, 16, 8, 4, 2):
        if t % cand == 0 and t // cand >= 2:
            return cand
    return t


# ----------------------------------------------------------------------------
# Wrapper
# ----------------------------------------------------------------------------
def xlstm_forward(x, wml, bml, wlin, blin):
    """x: (B, T, I) f32. Returns (hidden_state (B,H,E), cell_state (B,H,E,E))."""
    B, T, I = x.shape
    L, _, E = wml.shape
    H = L // 4

    # ---- pack weights into one wide matmul: (I, L*E + 2H), pad cols to 128 ----
    w_ml_flat = jnp.transpose(wml, (1, 0, 2)).reshape(I, L * E)   # [i, l*E + j]
    w_fused = jnp.concatenate([w_ml_flat, wlin.T], axis=1)        # (I, N)
    b_fused = jnp.concatenate([bml.reshape(L * E), blin])         # (N,)
    N = L * E + 2 * H
    N_pad = _round_up(N, 128)
    if N_pad != N:
        w_fused = jnp.pad(w_fused, ((0, 0), (0, N_pad - N)))
        b_fused = jnp.pad(b_fused, (0, N_pad - N))
    b_fused = b_fused.reshape(1, N_pad)

    # ---- projection over all timesteps (parallel grid, MXU-friendly) ----
    x_tm = jnp.transpose(x, (1, 0, 2)).reshape(T * B, I)          # row = t*B + b
    TB = T * B
    TM = _pick_row_tile(TB)
    gates_flat = pl.pallas_call(
        _proj_kernel,
        out_shape=jax.ShapeDtypeStruct((TB, N_pad), jnp.float32),
        grid_spec=pltpu.PrefetchScalarGridSpec(
            num_scalar_prefetch=0,
            grid=(TB // TM,),
            in_specs=[
                pl.BlockSpec((TM, I), lambda r: (r, 0)),
                pl.BlockSpec((I, N_pad), lambda r: (0, 0)),
                pl.BlockSpec((1, N_pad), lambda r: (0, 0)),
            ],
            out_specs=pl.BlockSpec((TM, N_pad), lambda r: (r, 0)),
        ),
        compiler_params=pltpu.CompilerParams(
            dimension_semantics=("parallel",)),
    )(x_tm, w_fused, b_fused)

    # ---- layout plumbing: gate-major slabs for the recurrent kernel ----
    gates = gates_flat[:, :N].reshape(T, B, N)
    mg = gates[:, :, : L * E].reshape(T, B, 4, H, E)
    mg = jnp.transpose(mg, (0, 2, 1, 3, 4))                       # (T, 4, B, H, E)
    lg = gates[:, :, L * E:].reshape(T, B, 2, H)
    lg = jnp.transpose(lg, (0, 2, 1, 3))                          # (T, 2, B, H)

    # ---- sequential recurrence, time-chunked ----
    TT = _pick_time_chunk(T)
    assert T % TT == 0

    grid_spec = pltpu.PrefetchScalarGridSpec(
        num_scalar_prefetch=0,
        grid=(T // TT,),
        in_specs=[
            pl.BlockSpec((TT, 4, B, H, E), lambda c: (c, 0, 0, 0, 0)),
            pl.BlockSpec((TT, 2, B, H), lambda c: (c, 0, 0, 0)),
        ],
        out_specs=[
            pl.BlockSpec((B, H, E), lambda c: (0, 0, 0)),
            pl.BlockSpec((B, H, E, E), lambda c: (0, 0, 0, 0)),
        ],
        scratch_shapes=[
            pltpu.VMEM((B, H), jnp.float32),        # m (stabilizer)
            pltpu.VMEM((B, H, E), jnp.float32),     # n (normalizer)
        ],
    )

    hidden_state, cell_state = pl.pallas_call(
        _xlstm_recurrent_kernel,
        out_shape=(jax.ShapeDtypeStruct((B, H, E), jnp.float32),
                   jax.ShapeDtypeStruct((B, H, E, E), jnp.float32)),
        grid_spec=grid_spec,
        compiler_params=pltpu.CompilerParams(
            dimension_semantics=("arbitrary",),          # time recurrence
            vmem_limit_bytes=48 * 1024 * 1024,           # headroom, < v7x 64 MiB
        ),
    )(mg, lg)

    return hidden_state, cell_state


# ----------------------------------------------------------------------------
# Pure-JAX replica of the PyTorch forward, for validation.
# ----------------------------------------------------------------------------
def xlstm_reference(x, wml, bml, wlin, blin):
    B, T, I = x.shape
    L, _, E = wml.shape
    H = L // 4
    hs = jnp.zeros((B, H, E), jnp.float32)
    cs = jnp.zeros((B, H, E, E), jnp.float32)
    m = jnp.zeros((B, H), jnp.float32)
    n = jnp.zeros((B, H, E), jnp.float32)
    for t in range(T):
        xt = x[:, t, :]
        lg = xt @ wlin.T + blin
        mg = jnp.einsum('bi,lij->blj', xt, wml) + bml
        o_, v, k, q = jnp.split(mg, 4, axis=1)
        o = jax.nn.sigmoid(o_)
        i_, f_ = lg[:, :H], lg[:, H:]
        m_new = jnp.maximum(f_ + m, i_)
        ig = jnp.exp(i_ - m_new)
        fg = jnp.exp(f_ + m - m_new)
        m = m_new
        cs = (fg[:, :, None, None] * cs
              + ig[:, :, None, None] * jnp.einsum('bli,blj->blij', v, k))
        n = fg[:, :, None] * n + ig[:, :, None] * k
        denom = jnp.clip(jnp.sum(n * q, axis=-1), 1.0, jnp.inf)
        hs = o * jnp.einsum('blij,bli->blj', cs, q) / denom[:, :, None]
    return hs, cs


if __name__ == "__main__":
    B, T = 2, 8
    input_size, hidden_size, embedding_dim = 16, 4, 8
    L = 4 * hidden_size

    key = jax.random.PRNGKey(0)
    k_x, k_wml, k_bml, k_wlin, k_blin = jax.random.split(key, 5)

    # deterministic synthetic init (xavier-style scales; not a checkpoint load)
    std_wml = math.sqrt(2.0 / (input_size * embedding_dim + L * embedding_dim))
    std_bml = math.sqrt(2.0 / (embedding_dim + L))
    wml = std_wml * jax.random.normal(k_wml, (L, input_size, embedding_dim), jnp.float32)
    bml = std_bml * jax.random.normal(k_bml, (L, embedding_dim), jnp.float32)
    bound = 1.0 / math.sqrt(input_size)
    wlin = jax.random.uniform(k_wlin, (2 * hidden_size, input_size), jnp.float32, -bound, bound)
    blin = jax.random.uniform(k_blin, (2 * hidden_size,), jnp.float32, -bound, bound)

    x = jax.random.normal(k_x, (B, T, input_size), jnp.float32)

    h, c = xlstm_forward(x, wml, bml, wlin, blin)
    jax.block_until_ready((h, c))

    h_ref, c_ref = xlstm_reference(x, wml, bml, wlin, blin)
    assert jnp.allclose(h, h_ref, atol=1e-4, rtol=1e-4), "hidden_state mismatch"
    assert jnp.allclose(c, c_ref, atol=1e-4, rtol=1e-4), "cell_state mismatch"
    print("KERNEL_OK")
</pallas_src>

<mosaic_0001>
module attributes {stable_mosaic.version = 11 : i64} {
  func.func @_proj_kernel(%arg0: i32, %arg1: memref<16x16xf32, #tpu.memory_space<vmem>>, %arg2: memref<16x256xf32, #tpu.memory_space<vmem>>, %arg3: memref<1x256xf32, #tpu.memory_space<vmem>>, %arg4: memref<16x256xf32, #tpu.memory_space<vmem>>) attributes {dimension_semantics = [#tpu.dimension_semantics<parallel>], iteration_bounds = array<i64: 1>, scalar_prefetch = 0 : i64, scratch_operands = 0 : i64, tpu.core_type = #tpu.core_type<tc>, window_params = [{transform_indices = @transform_0, window_bounds = array<i64: 16, 16>}, {pipeline_mode = #tpu.pipeline_mode<synchronous>, transform_indices = @transform_1, window_bounds = array<i64: 16, 256>}, {pipeline_mode = #tpu.pipeline_mode<synchronous>, transform_indices = @transform_2, window_bounds = array<i64: 1, 256>}, {transform_indices = @transform_3, window_bounds = array<i64: 16, 256>}]} {
    %c0 = arith.constant 0 : index
    %c0_0 = arith.constant 0 : index
    %0 = vector.load %arg1[%c0, %c0_0] : memref<16x16xf32, #tpu.memory_space<vmem>>, vector<16x16xf32>
    %c0_1 = arith.constant 0 : index
    %c0_2 = arith.constant 0 : index
    %1 = vector.load %arg2[%c0_1, %c0_2] : memref<16x256xf32, #tpu.memory_space<vmem>>, vector<16x256xf32>
    %cst = arith.constant dense<0.000000e+00> : vector<16x256xf32>
    %2 = tpu.matmul %0, %1, %cst {dimension_numbers = #tpu.dot_dimension_numbers<[1], [0], [0], [1], [0, 0, 1, 1], [], []>} : vector<16x16xf32>, vector<16x256xf32>, vector<16x256xf32> -> vector<16x256xf32>
    %c0_3 = arith.constant 0 : index
    %c0_4 = arith.constant 0 : index
    %3 = vector.load %arg3[%c0_3, %c0_4] : memref<1x256xf32, #tpu.memory_space<vmem>>, vector<1x256xf32>
    %4 = vector.broadcast %3 : vector<1x256xf32> to vector<16x256xf32>
    %5 = arith.addf %2, %4 : vector<16x256xf32>
    %c0_5 = arith.constant 0 : index
    %c0_6 = arith.constant 0 : index
    %6 = vector.load %arg4[%c0_5, %c0_6] : memref<16x256xf32, #tpu.memory_space<vmem>>, vector<16x256xf32>
    tpu.vector_store %arg4[%c0_5, %c0_6], %5 {strides = array<i32>} : memref<16x256xf32, #tpu.memory_space<vmem>>, vector<16x256xf32>,
    return
  }
  func.func @transform_0(%arg0: i32) -> (i32, i32) {
    %c0_i32 = arith.constant 0 : i32
    %c0_i32_0 = arith.constant 0 : i32
    return %arg0, %c0_i32 : i32, i32
  }
  func.func @transform_1(%arg0: i32) -> (i32, i32) {
    %c0_i32 = arith.constant 0 : i32
    %c0_i32_0 = arith.constant 0 : i32
    %c0_i32_1 = arith.constant 0 : i32
    return %c0_i32, %c0_i32_0 : i32, i32
  }
  func.func @transform_2(%arg0: i32) -> (i32, i32) {
    %c0_i32 = arith.constant 0 : i32
    %c0_i32_0 = arith.constant 0 : i32
    %c0_i32_1 = arith.constant 0 : i32
    return %c0_i32, %c0_i32_0 : i32, i32
  }
  func.func @transform_3(%arg0: i32) -> (i32, i32) {
    %c0_i32 = arith.constant 0 : i32
    %c0_i32_0 = arith.constant 0 : i32
    return %arg0, %c0_i32 : i32, i32
  }
}

</mosaic_0001>

<bundles_post_ra>
// kernel: tpu_custom_call.1
= control target key start
LH: loop header
LB: loop body
LE: loop exit
PB: predicated region body
PF: predicated region fallthrough
CT: control target
= control target key end

     0   :  { %8 = vsyncpa [#allocation3], 0  ;;  %s293_s0 = inlined_call_operand.hbm [shape: f32[16,16], index: 0, kind: input, shape index: {}]   ;;  %s294_s1 = inlined_call_operand.hbm [shape: f32[16,256], index: 1, kind: input, shape index: {}]   ;;  %s295_s2 = inlined_call_operand.vmem [shape: f32[1,256], index: 2, kind: input, shape index: {}]   ;;  %s296_s3 = inlined_call_operand.hbm [shape: f32[16,256], index: 3, kind: output, shape index: {}]  }
   0x1   :  { %9 = vsyncpa [#allocation6], 0 }
   0x2   :  { %10 = vsyncpa [#allocation4], 0  ;;  %s247_s12 = smov [#allocation2]  }
   0x3   :  { %s16_s13 = sshll.u32 %s247_s12, 4  ;;  %s17_s13 = int_to_ptr.vmem [resolvable:$true] %s16_s13 }
   0x4   :  { %s189_s14 = scalar_lea.vmem %s17_s13, 256  ;;  %p194_p1 = scmp.lt.s32.totalorder %s17_s13, %s17_s13 }
   0x5   :  { %p190_p0 = scmp.ne.s32.totalorder %s17_s13, %s189_s14  ;;  %p195_p2 = scmp.lt.s32.totalorder %s189_s14, %s189_s14 }
   0x7   :  { %p196_p3 = por %p195_p2, %p194_p1 }
   0x9   :  { %p197_p4 = pnand %p196_p3, %p190_p0 }
   0xb   :  { %200 = shalt.err (!%p197_p4)
}
   0xc   :  { %s248_s15 = smov 128   ;;  %s249_s16 = smov 8  }
   0xd   :  { %22 = dma.hbm_to_vmem [thread:$0]  %s293_s0, 256, %s17_s13, [#allocation3], %s248_s15, %s248_s15, %s249_s16  }
   0xe   :  { %s250_s19 = smov [#allocation5]  }
   0xf   :  { %s28_s20 = sshll.u32 %s250_s19, 4  ;;  %s29_s20 = int_to_ptr.vmem [resolvable:$true] %s28_s20 }
  0x10   :  { %s209_s21 = scalar_lea.vmem %s29_s20, 512  ;;  %p214_p6 = scmp.lt.s32.totalorder %s29_s20, %s29_s20 }
  0x11   :  { %p210_p5 = scmp.ne.s32.totalorder %s29_s20, %s209_s21  ;;  %p215_p7 = scmp.lt.s32.totalorder %s209_s21, %s209_s21 }
  0x13   :  { %p216_p8 = por %p215_p7, %p214_p6 }
  0x15   :  { %p217_p9 = pnand %p216_p8, %p210_p5 }
  0x17   :  { %220 = shalt.err (!%p217_p9)
}
  0x18   :  { %s251_s22 = smov 256   ;;  %s252_s23 = smov 16  }
  0x19   :  { %34 = dma.hbm_to_vmem [thread:$0]  %s294_s1, 512, %s29_s20, [#allocation6], %s251_s22, %s251_s22, %s252_s23  }
  0x1a   :  { %241 = dma.done.wait [#allocation3], 256  }
  0x1b   :  { %242 = vsyncadd [#allocation3], 4294967040 }
  0x1c   :  { %243 = dma.done.wait [#allocation6], 512  }
  0x1d   :  { %244 = vsyncadd [#allocation6], 4294966784  ;;  %v253_v0 = vmov 0.0   ;;  %v48_v1 = vld [vmem:[#allocation5 + $0x18] sm:$0xff]  ;;  %v47_v2 = vld [vmem:[#allocation5 + $0x10] sm:$0xff]  ;;  %vm61_vm0 = vcmask 130048   ;;  %v51_v7 = vlaneseq }
  0x1e   :  { %132 = vmatprep.mubr.f32.mxu0 %v253_v0  ;;  %138 = vmatprep.mubr.f32.mxu1 %v253_v0  ;;  %v46_v3 = vld [vmem:[#allocation5 + $0x8] sm:$0xff]  ;;  %v45_v4 = vld [vmem:[#allocation5] sm:$0xff]  ;;  %v43_v5 = vld [vmem:[#allocation2] sm:$0xff]  ;;  %s254_s26 = smov [#allocation7]  }
  0x1f   :  { %96 = vmatprep.subr.mxu0 %v48_v1  ;;  %169 = vmatprep.subr.mxu1 %v48_v1  ;;  %v44_v6 = vld [vmem:[#allocation2 + $0x8] sm:$0xff]  ;;  %v52_v8 = vshrl.u32 %v51_v7, 7  ;;  %v49_v10 = vld [vmem:[%s295_s2] sm:$0x3]  ;;  %s154_s27 = sshll.u32 %s254_s26, 4  ;;  %s155_s27 = int_to_ptr.vmem [resolvable:$true] %s154_s27 }
  0x20   :  { %97 = vmatpush1.msra.mxu0 %v47_v2  ;;  %171 = vmatpush1.msra.mxu1 %v47_v2  ;;  %s221_s28 = scalar_lea.vmem %s155_s27, 512  ;;  %p226_p11 = scmp.lt.s32.totalorder %s155_s27, %s155_s27 }
  0x21   :  { %98 = vmatprep.subr.mxu0 %v46_v3  ;;  %170 = vmatprep.subr.mxu1 %v46_v3  ;;  %v53_v9 = vsub.s32 0, %v52_v8  ;;  %v57_v11 = vsub.s32 1, %v52_v8  ;;  %p222_p10 = scmp.ne.s32.totalorder %s155_s27, %s221_s28  ;;  %p227_p12 = scmp.lt.s32.totalorder %s221_s28, %s221_s28 }
  0x22   :  { %99 = vmatpush1.msra.mxu0 %v45_v4  ;;  %172 = vmatpush1.msra.mxu1 %v45_v4 }
  0x23   :  { %167 = vmatmul.mubr.msk.f32.vlgmr.msra.gmra.mxu0 %vm61_vm0, %v43_v5  ;;  %168 = vmatmul.mubr.msk.f32.vlgmr.msra.gmra.mxu1 %vm61_vm0, %v44_v6  ;;  %v54_v12 = vrot.slane %v49_v10, %v53_v9  ;;  %v58_v13 = vrot.slane %v49_v10, %v57_v11  ;;  %p228_p13 = por %p227_p12, %p226_p11 }
  0x25   :  { %p229_p0 = pnand %p228_p13, %p222_p10 }
  0xe3   :  { %v134_v14 = vpop.f32.mrf.mxu0  ;;  %v140_v15 = vpop.f32.mrf.mxu1 }
  0xe4   :  { %v135_v16 = vadd.f32 %v134_v14, %v54_v12  ;;  %v141_v17 = vadd.f32 %v140_v15, %v54_v12 }
  0xe5   :  { %v136_v18 = vpop.f32.mrf.mxu0  ;;  %v142_v19 = vpop.f32.mrf.mxu1 }
  0xe6   :  { %145 = vst [vmem:[#allocation7] sm:$0xff] %v135_v16  ;;  %147 = vst [vmem:[#allocation7 + $0x10] sm:$0xff] %v141_v17  ;;  %v137_v20 = vadd.f32 %v136_v18, %v58_v13  ;;  %v143_v21 = vadd.f32 %v142_v19, %v58_v13 }
  0xe8   :  { %146 = vst [vmem:[#allocation7 + $0x8] sm:$0xff] %v137_v20  ;;  %148 = vst [vmem:[#allocation7 + $0x18] sm:$0xff] %v143_v21 }
  0xe9   :  { %232 = shalt.err (!%p229_p0)
}
  0xea   :  { %160 = dma.vmem_to_hbm [thread:$0]  %s155_s27, 512, %s296_s3, [#allocation4], %s251_s22, %s251_s22, %s252_s23  }
  0xeb   :  { %245 = dma.done.wait [#allocation4], 512  }
  0xec   :  { %246 = vsyncadd [#allocation4], 4294966784 }
  0xed   :  { %164 = vsyncpa [#allocation3], 1 }
  0xee   :  { %165 = vsyncpa [#allocation6], 1 }
  0xef   :  { %166 = vsyncpa [#allocation4], 1 }

</bundles_post_ra>
